<compile_context>
chip_gen: v6e
topology: v6e:2x2x1
jax: 0.10.0
libtpu: 0.0.40
codegen_flags: <defaults>
</compile_context>

<pallas_src>
import functools

import jax
import jax.numpy as jnp
from jax.experimental import pallas as pl
from jax.experimental.pallas import tpu as pltpu


def _round_up(x, m):
    return ((x + m - 1) // m) * m


def _pick_tf(d_ff, tf_max):
    """Largest d_ff chunk <= tf_max that is a multiple of 128 and divides d_ff."""
    if d_ff <= tf_max:
        return d_ff
    for cand in range((tf_max // 128) * 128, 0, -128):
        if cand > 0 and d_ff % cand == 0:
            return cand
    return d_ff  # fallback: whole d_ff in one chunk


def _ffn_kernel(x_ref, w1_ref, w2_ref, o_ref, acc_ref):
    """One (row-tile, d_ff-chunk) step of: o = gelu(x @ w1t) @ w2t."""
    k = pl.program_id(1)

    @pl.when(k == 0)
    def _():
        acc_ref[...] = jnp.zeros_like(acc_ref)

    # First projection for this d_ff chunk (MXU), f32 accumulate.
    h = jnp.dot(x_ref[...], w1_ref[...], preferred_element_type=jnp.float32)

    # GELU (tanh approximation) in f32 — VPU/EUP elementwise.
    c = jnp.sqrt(2.0 / jnp.pi).astype(jnp.float32)
    g = 0.5 * h * (1.0 + jnp.tanh(c * (h + 0.044715 * (h * h * h))))

    # Second projection for this chunk, accumulated into VMEM scratch.
    acc_ref[...] += jnp.dot(g.astype(w2_ref.dtype), w2_ref[...],
                            preferred_element_type=jnp.float32)

    @pl.when(k == pl.num_programs(1) - 1)
    def _():
        o_ref[...] = acc_ref[...].astype(o_ref.dtype)


@functools.partial(jax.jit, static_argnames=("tm", "tf"))
def feed_forward_network(x, w1t, w2t, *, tm=256, tf=512):
    """x: (batch, seq, d_model); w1t: (d_model, d_ff); w2t: (d_ff, d_model)."""
    batch, seq, d_model = x.shape
    d_ff = w1t.shape[1]
    M = batch * seq

    # ---- tile selection ----------------------------------------------------
    tm = _round_up(max(8, tm), 8)
    tm = min(tm, _round_up(M, 8))          # don't over-tile tiny inputs
    tf = _pick_tf(d_ff, max(128, tf))      # multiple of 128 dividing d_ff
    n_ff = d_ff // tf

    # ---- pad rows up to a multiple of tm (zeros are harmless) --------------
    x2d = x.reshape(M, d_model)
    M_pad = _round_up(M, tm)
    if M_pad != M:
        x2d = jnp.pad(x2d, ((0, M_pad - M), (0, 0)))

    # ---- explicit VMEM budget for the chosen tiles --------------------------
    xb = jnp.dtype(x.dtype).itemsize
    wb = jnp.dtype(w1t.dtype).itemsize
    vmem_bytes = (
        2 * tm * d_model * xb          # x tiles (double-buffered)
        + 2 * d_model * tf * wb        # w1t chunks
        + 2 * tf * d_model * wb        # w2t chunks
        + 2 * tm * d_model * xb        # out tiles
        + tm * d_model * 4             # f32 accumulator scratch
        + (4 << 20)                    # headroom
    )
    vmem_limit = int(min(max(vmem_bytes, 16 << 20), 64 << 20))

    out2d = pl.pallas_call(
        _ffn_kernel,
        out_shape=jax.ShapeDtypeStruct((M_pad, d_model), x.dtype),
        grid_spec=pltpu.PrefetchScalarGridSpec(
            num_scalar_prefetch=0,
            grid=(M_pad // tm, n_ff),
            in_specs=[
                pl.BlockSpec((tm, d_model), lambda i, k: (i, 0)),   # x rows
                pl.BlockSpec((d_model, tf), lambda i, k: (0, k)),   # w1t chunk
                pl.BlockSpec((tf, d_model), lambda i, k: (k, 0)),   # w2t chunk
            ],
            out_specs=pl.BlockSpec((tm, d_model), lambda i, k: (i, 0)),
            scratch_shapes=[pltpu.VMEM((tm, d_model), jnp.float32)],
        ),
        compiler_params=pltpu.CompilerParams(
            dimension_semantics=("parallel", "arbitrary"),
            vmem_limit_bytes=vmem_limit,
        ),
    )(x2d, w1t, w2t)

    if M_pad != M:
        out2d = out2d[:M]
    return out2d.reshape(batch, seq, d_model)


def _reference(x, w1t, w2t):
    h = x @ w1t
    c = jnp.sqrt(2.0 / jnp.pi)
    g = 0.5 * h * (1.0 + jnp.tanh(c * (h + 0.044715 * h**3)))
    return g @ w2t


if __name__ == "__main__":
    # Small shapes consistent with the module's forward: (batch, seq, d_model).
    batch, seq, d_model, d_ff = 2, 8, 128, 256

    key = jax.random.PRNGKey(0)
    kx, k1, k2 = jax.random.split(key, 3)

    x = jax.random.normal(kx, (batch, seq, d_model), dtype=jnp.float32)
    # Deterministic parameter init (torch Linear weight is (out, in); stored
    # here already transposed as (in, out)).
    w1t = (jax.random.normal(k1, (d_model, d_ff), dtype=jnp.float32)
           * (1.0 / jnp.sqrt(d_model)))
    w2t = (jax.random.normal(k2, (d_ff, d_model), dtype=jnp.float32)
           * (1.0 / jnp.sqrt(d_ff)))

    # Default tile path (single d_ff chunk at this toy size).
    out = feed_forward_network(x, w1t, w2t)
    out = jax.block_until_ready(out)
    ref = _reference(x, w1t, w2t)
    assert out.shape == (batch, seq, d_model)
    assert jnp.allclose(out, ref, atol=1e-4, rtol=1e-4)

    # Exercise the multi-chunk accumulation + row-padding path explicitly.
    out2 = feed_forward_network(x[:, :5], w1t, w2t, tm=16, tf=128)
    out2 = jax.block_until_ready(out2)
    ref2 = _reference(x[:, :5], w1t, w2t)
    assert jnp.allclose(out2, ref2, atol=1e-4, rtol=1e-4)

    print("KERNEL_OK")
</pallas_src>

<mosaic_0001>
module attributes {stable_mosaic.version = 11 : i64} {
  func.func @_ffn_kernel(%arg0: i32, %arg1: i32, %arg2: memref<16x128xf32, #tpu.memory_space<vmem>>, %arg3: memref<128x256xf32, #tpu.memory_space<vmem>>, %arg4: memref<256x128xf32, #tpu.memory_space<vmem>>, %arg5: memref<16x128xf32, #tpu.memory_space<vmem>>, %arg6: memref<16x128xf32, #tpu.memory_space<vmem>>) attributes {dimension_semantics = [#tpu.dimension_semantics<parallel>, #tpu.dimension_semantics<arbitrary>], iteration_bounds = array<i64: 1, 1>, scalar_prefetch = 0 : i64, scratch_operands = 1 : i64, tpu.core_type = #tpu.core_type<tc>, window_params = [{transform_indices = @transform_0, window_bounds = array<i64: 16, 128>}, {transform_indices = @transform_1, window_bounds = array<i64: 128, 256>}, {transform_indices = @transform_2, window_bounds = array<i64: 256, 128>}, {transform_indices = @transform_3, window_bounds = array<i64: 16, 128>}]} {
    %c0_i32 = arith.constant 0 : i32
    %0 = arith.cmpi eq, %arg1, %c0_i32 : i32
    %1 = arith.extui %0 : i1 to i32
    %c0_i32_0 = arith.constant 0 : i32
    %2 = arith.cmpi ne, %1, %c0_i32_0 : i32
    scf.if %2 {
      %cst_17 = arith.constant 0.000000e+00 : f32
      %28 = vector.broadcast %cst_17 : f32 to vector<16x128xf32>
      %c0_18 = arith.constant 0 : index
      %c0_19 = arith.constant 0 : index
      %29 = vector.load %arg6[%c0_18, %c0_19] : memref<16x128xf32, #tpu.memory_space<vmem>>, vector<16x128xf32>
      tpu.vector_store %arg6[%c0_18, %c0_19], %28 {strides = array<i32>} : memref<16x128xf32, #tpu.memory_space<vmem>>, vector<16x128xf32>,
    } else {
    }
    %c0 = arith.constant 0 : index
    %c0_1 = arith.constant 0 : index
    %3 = vector.load %arg2[%c0, %c0_1] : memref<16x128xf32, #tpu.memory_space<vmem>>, vector<16x128xf32>
    %c0_2 = arith.constant 0 : index
    %c0_3 = arith.constant 0 : index
    %4 = vector.load %arg3[%c0_2, %c0_3] : memref<128x256xf32, #tpu.memory_space<vmem>>, vector<128x256xf32>
    %cst = arith.constant dense<0.000000e+00> : vector<16x256xf32>
    %5 = tpu.matmul %3, %4, %cst {dimension_numbers = #tpu.dot_dimension_numbers<[1], [0], [0], [1], [0, 0, 1, 1], [], []>} : vector<16x128xf32>, vector<128x256xf32>, vector<16x256xf32> -> vector<16x256xf32>
    %cst_4 = arith.constant 0.636619746 : f32
    %6 = math.sqrt %cst_4 : f32
    %cst_5 = arith.constant 5.000000e-01 : f32
    %7 = vector.broadcast %cst_5 : f32 to vector<16x256xf32>
    %8 = arith.mulf %7, %5 : vector<16x256xf32>
    %9 = arith.mulf %5, %5 : vector<16x256xf32>
    %10 = arith.mulf %9, %5 : vector<16x256xf32>
    %cst_6 = arith.constant 4.471500e-02 : f32
    %11 = vector.broadcast %cst_6 : f32 to vector<16x256xf32>
    %12 = arith.mulf %11, %10 : vector<16x256xf32>
    %13 = arith.addf %5, %12 : vector<16x256xf32>
    %14 = vector.broadcast %6 : f32 to vector<16x256xf32>
    %15 = arith.mulf %14, %13 : vector<16x256xf32>
    %16 = math.tanh %15 : vector<16x256xf32>
    %cst_7 = arith.constant 1.000000e+00 : f32
    %17 = vector.broadcast %cst_7 : f32 to vector<16x256xf32>
    %18 = arith.addf %17, %16 : vector<16x256xf32>
    %19 = arith.mulf %8, %18 : vector<16x256xf32>
    %c0_8 = arith.constant 0 : index
    %c0_9 = arith.constant 0 : index
    %20 = vector.load %arg6[%c0_8, %c0_9] : memref<16x128xf32, #tpu.memory_space<vmem>>, vector<16x128xf32>
    %c0_10 = arith.constant 0 : index
    %c0_11 = arith.constant 0 : index
    %21 = vector.load %arg4[%c0_10, %c0_11] : memref<256x128xf32, #tpu.memory_space<vmem>>, vector<256x128xf32>
    %cst_12 = arith.constant dense<0.000000e+00> : vector<16x128xf32>
    %22 = tpu.matmul %19, %21, %cst_12 {dimension_numbers = #tpu.dot_dimension_numbers<[1], [0], [0], [1], [0, 0, 1, 1], [], []>} : vector<16x256xf32>, vector<256x128xf32>, vector<16x128xf32> -> vector<16x128xf32>
    %23 = arith.addf %20, %22 : vector<16x128xf32>
    %c0_13 = arith.constant 0 : index
    %c0_14 = arith.constant 0 : index
    %24 = vector.load %arg6[%c0_13, %c0_14] : memref<16x128xf32, #tpu.memory_space<vmem>>, vector<16x128xf32>
    tpu.vector_store %arg6[%c0_13, %c0_14], %23 {strides = array<i32>} : memref<16x128xf32, #tpu.memory_space<vmem>>, vector<16x128xf32>,
    %c0_i32_15 = arith.constant 0 : i32
    %25 = arith.cmpi eq, %arg1, %c0_i32_15 : i32
    %26 = arith.extui %25 : i1 to i32
    %c0_i32_16 = arith.constant 0 : i32
    %27 = arith.cmpi ne, %26, %c0_i32_16 : i32
    scf.if %27 {
      %c0_17 = arith.constant 0 : index
      %c0_18 = arith.constant 0 : index
      %28 = vector.load %arg6[%c0_17, %c0_18] : memref<16x128xf32, #tpu.memory_space<vmem>>, vector<16x128xf32>
      %c0_19 = arith.constant 0 : index
      %c0_20 = arith.constant 0 : index
      %29 = vector.load %arg5[%c0_19, %c0_20] : memref<16x128xf32, #tpu.memory_space<vmem>>, vector<16x128xf32>
      tpu.vector_store %arg5[%c0_19, %c0_20], %28 {strides = array<i32>} : memref<16x128xf32, #tpu.memory_space<vmem>>, vector<16x128xf32>,
    } else {
    }
    return
  }
  func.func @transform_0(%arg0: i32, %arg1: i32) -> (i32, i32) {
    %c0_i32 = arith.constant 0 : i32
    %c0_i32_0 = arith.constant 0 : i32
    return %arg0, %c0_i32 : i32, i32
  }
  func.func @transform_1(%arg0: i32, %arg1: i32) -> (i32, i32) {
    %c0_i32 = arith.constant 0 : i32
    %c0_i32_0 = arith.constant 0 : i32
    return %c0_i32, %arg1 : i32, i32
  }
  func.func @transform_2(%arg0: i32, %arg1: i32) -> (i32, i32) {
    %c0_i32 = arith.constant 0 : i32
    %c0_i32_0 = arith.constant 0 : i32
    return %arg1, %c0_i32 : i32, i32
  }
  func.func @transform_3(%arg0: i32, %arg1: i32) -> (i32, i32) {
    %c0_i32 = arith.constant 0 : i32
    %c0_i32_0 = arith.constant 0 : i32
    return %arg0, %c0_i32 : i32, i32
  }
}

</mosaic_0001>

<bundles_post_ra>
// kernel: feed_forward_network.1
= control target key start
LH: loop header
LB: loop body
LE: loop exit
PB: predicated region body
PF: predicated region fallthrough
CT: control target
= control target key end

     0   :  { %8 = vsyncpa [#allocation4], 0  ;;  %s540_s0 = inlined_call_operand.hbm [shape: f32[16,128], index: 0, kind: input, shape index: {}]   ;;  %s541_s1 = inlined_call_operand.hbm [shape: f32[128,256], index: 1, kind: input, shape index: {}]   ;;  %s542_s2 = inlined_call_operand.hbm [shape: f32[256,128], index: 2, kind: input, shape index: {}]   ;;  %s543_s3 = inlined_call_operand.hbm [shape: f32[16,128], index: 3, kind: output, shape index: {}]  }
   0x1   :  { %9 = vsyncpa [#allocation7], 0 }
   0x2   :  { %10 = vsyncpa [#allocation5], 0  ;;  %s488_s12 = smov [#allocation6]  }
   0x3   :  { %s28_s13 = sshll.u32 %s488_s12, 4  ;;  %s29_s13 = int_to_ptr.vmem [resolvable:$true] %s28_s13 }
   0x4   :  { %s410_s14 = scalar_lea.vmem %s29_s13, 4096  ;;  %p415_p1 = scmp.lt.s32.totalorder %s29_s13, %s29_s13 }
   0x5   :  { %p411_p0 = scmp.ne.s32.totalorder %s29_s13, %s410_s14  ;;  %p416_p2 = scmp.lt.s32.totalorder %s410_s14, %s410_s14 }
   0x7   :  { %p417_p3 = por %p416_p2, %p415_p1 }
   0x9   :  { %p418_p4 = pnand %p417_p3, %p411_p0 }
   0xb   :  { %421 = shalt.err (!%p418_p4)
}
   0xc   :  { %s489_s15 = smov 256   ;;  %s490_s16 = smov 16  }
   0xd   :  { %34 = dma.hbm_to_vmem [thread:$0]  %s541_s1, 4096, %s29_s13, [#allocation7], %s489_s15, %s489_s15, %s490_s16  }
   0xe   :  { %s491_s19 = smov [#allocation3]  }
   0xf   :  { %s16_s20 = sshll.u32 %s491_s19, 4  ;;  %s17_s20 = int_to_ptr.vmem [resolvable:$true] %s16_s20 }
  0x10   :  { %s430_s21 = scalar_lea.vmem %s17_s20, 256  ;;  %p435_p6 = scmp.lt.s32.totalorder %s17_s20, %s17_s20 }
  0x11   :  { %p431_p5 = scmp.ne.s32.totalorder %s17_s20, %s430_s21  ;;  %p436_p7 = scmp.lt.s32.totalorder %s430_s21, %s430_s21 }
  0x13   :  { %p437_p8 = por %p436_p7, %p435_p6 }
  0x15   :  { %p438_p9 = pnand %p437_p8, %p431_p5 }
  0x17   :  { %441 = shalt.err (!%p438_p9)
}
  0x18   :  { %s492_s22 = smov 128   ;;  %s493_s23 = smov 8  }
  0x19   :  { %22 = dma.hbm_to_vmem [thread:$0]  %s540_s0, 256, %s17_s20, [#allocation4], %s492_s22, %s492_s22, %s493_s23  }
  0x1a   :  { %s494_s1 = smov [#allocation8]  }
  0x1b   :  { %s40_s26 = sshll.u32 %s494_s1, 4  ;;  %s41_s26 = int_to_ptr.vmem [resolvable:$true] %s40_s26 }
  0x1c   :  { %s450_s27 = scalar_lea.vmem %s41_s26, 4096  ;;  %p455_p11 = scmp.lt.s32.totalorder %s41_s26, %s41_s26 }
  0x1d   :  { %p451_p10 = scmp.ne.s32.totalorder %s41_s26, %s450_s27  ;;  %p456_p12 = scmp.lt.s32.totalorder %s450_s27, %s450_s27 }
  0x1f   :  { %p457_p13 = por %p456_p12, %p455_p11 }
  0x21   :  { %p458_p0 = pnand %p457_p13, %p451_p10 }
  0x23   :  { %461 = shalt.err (!%p458_p0)
}
  0x24   :  { %46 = dma.hbm_to_vmem [thread:$0]  %s542_s2, 4096, %s41_s26, [#allocation7], %s492_s22, %s492_s22, %s493_s23  }
  0x25   :  { %482 = dma.done.wait [#allocation4], 256  }
  0x26   :  { %483 = vsyncadd [#allocation4], 4294967040 }
  0x27   :  { %484 = dma.done.wait [#allocation7], 8192  }
  0x28   :  { %485 = vsyncadd [#allocation7], 4294959104  ;;  %v495_v0 = vmov 0.0   ;;  %v95_v1 = vld [vmem:[#allocation6 + $0xf8] sm:$0xff]  ;;  %v94_v2 = vld [vmem:[#allocation6 + $0xf0] sm:$0xff]  ;;  %s496_s0 = smov [#allocation9]  }
  0x29   :  { %160 = vmatprep.mubr.f32.mxu0 %v495_v0  ;;  %v93_v3 = vld [vmem:[#allocation6 + $0xe8] sm:$0xff]  ;;  %96 = vmatprep.subr.mxu0 %v95_v1  ;;  %v92_v4 = vld [vmem:[#allocation6 + $0xe0] sm:$0xff]  ;;  %v91_v5 = vld [vmem:[#allocation6 + $0xd8] sm:$0xff]  ;;  %s334_s2 = sshll.u32 %s496_s0, 4  ;;  %s335_s2 = int_to_ptr.vmem [resolvable:$true] %s334_s2 }
  0x2a   :  { %97 = vmatpush1.msra.mxu0 %v94_v2  ;;  %v90_v6 = vld [vmem:[#allocation6 + $0xd0] sm:$0xff]  ;;  %v89_v7 = vld [vmem:[#allocation6 + $0xc8] sm:$0xff]  ;;  %v88_v8 = vld [vmem:[#allocation6 + $0xc0] sm:$0xff]  ;;  %s462_s30 = scalar_lea.vmem %s335_s2, 256  ;;  %p467_p2 = scmp.lt.s32.totalorder %s335_s2, %s335_s2 }
  0x2b   :  { %98 = vmatprep.subr.mxu0 %v93_v3  ;;  %v87_v9 = vld [vmem:[#allocation6 + $0xb8] sm:$0xff]  ;;  %v86_v10 = vld [vmem:[#allocation6 + $0xb0] sm:$0xff]  ;;  %v85_v11 = vld [vmem:[#allocation6 + $0xa8] sm:$0xff]  ;;  %p463_p1 = scmp.ne.s32.totalorder %s335_s2, %s462_s30  ;;  %p468_p3 = scmp.lt.s32.totalorder %s462_s30, %s462_s30 }
  0x2c   :  { %99 = vmatpush1.msra.mxu0 %v92_v4  ;;  %v84_v12 = vld [vmem:[#allocation6 + $0xa0] sm:$0xff]  ;;  %v83_v13 = vld [vmem:[#allocation6 + $0x98] sm:$0xff]  ;;  %v82_v14 = vld [vmem:[#allocation6 + $0x90] sm:$0xff] }
  0x2d   :  { %100 = vmatprep.subr.mxu0 %v91_v5  ;;  %v81_v15 = vld [vmem:[#allocation6 + $0x88] sm:$0xff]  ;;  %v80_v16 = vld [vmem:[#allocation6 + $0x80] sm:$0xff]  ;;  %v79_v17 = vld [vmem:[#allocation6 + $0x78] sm:$0xff]  ;;  %p469_p4 = por %p468_p3, %p467_p2 }
  0x2e   :  { %101 = vmatpush1.msra.mxu0 %v90_v6  ;;  %v78_v18 = vld [vmem:[#allocation6 + $0x70] sm:$0xff]  ;;  %v77_v19 = vld [vmem:[#allocation6 + $0x68] sm:$0xff]  ;;  %v76_v20 = vld [vmem:[#allocation6 + $0x60] sm:$0xff] }
  0x2f   :  { %102 = vmatprep.subr.mxu0 %v89_v7  ;;  %v75_v21 = vld [vmem:[#allocation6 + $0x58] sm:$0xff]  ;;  %v74_v22 = vld [vmem:[#allocation6 + $0x50] sm:$0xff]  ;;  %v73_v23 = vld [vmem:[#allocation6 + $0x48] sm:$0xff]  ;;  %p470_p5 = pnand %p469_p4, %p463_p1 }
  0x30   :  { %103 = vmatpush1.msra.mxu0 %v88_v8  ;;  %v72_v24 = vld [vmem:[#allocation6 + $0x40] sm:$0xff]  ;;  %v71_v25 = vld [vmem:[#allocation6 + $0x38] sm:$0xff]  ;;  %v70_v26 = vld [vmem:[#allocation6 + $0x30] sm:$0xff] }
  0x31   :  { %104 = vmatprep.subr.mxu0 %v87_v9  ;;  %v69_v27 = vld [vmem:[#allocation6 + $0x28] sm:$0xff]  ;;  %v68_v28 = vld [vmem:[#allocation6 + $0x20] sm:$0xff]  ;;  %v67_v29 = vld [vmem:[#allocation6 + $0x18] sm:$0xff] }
  0x32   :  { %105 = vmatpush1.msra.mxu0 %v86_v10  ;;  %v66_v30 = vld [vmem:[#allocation6 + $0x10] sm:$0xff]  ;;  %v65_v31 = vld [vmem:[#allocation6 + $0x8] sm:$0xff]  ;;  %v64_v32 = vld [vmem:[#allocation6] sm:$0xff] }
  0x33   :  { %106 = vmatprep.subr.mxu0 %v85_v11  ;;  %v62_v33 = vld [vmem:[#allocation3] sm:$0xff]  ;;  %v63_v34 = vld [vmem:[#allocation3 + $0x8] sm:$0xff]  ;;  %v240_v39 = vld [vmem:[#allocation8 + $0xe8] sm:$0xff] }
  0x34   :  { %107 = vmatpush1.msra.mxu0 %v84_v12  ;;  %v242_v35 = vld [vmem:[#allocation8 + $0xf8] sm:$0xff]  ;;  %v241_v37 = vld [vmem:[#allocation8 + $0xf0] sm:$0xff]  ;;  %v224_v40 = vld [vmem:[#allocation8 + $0x68] sm:$0xff] }
  0x35   :  { %108 = vmatprep.subr.mxu0 %v83_v13  ;;  %347 = vmatprep.subr.mxu1 %v242_v35  ;;  %v226_v36 = vld [vmem:[#allocation8 + $0x78] sm:$0xff]  ;;  %v225_v38 = vld [vmem:[#allocation8 + $0x70] sm:$0xff]  ;;  %v239_v41 = vld [vmem:[#allocation8 + $0xe0] sm:$0xff] }
  0x36   :  { %109 = vmatpush1.msra.mxu0 %v82_v14  ;;  %348 = vmatpush3.msra.mxu1 %v226_v36  ;;  %v223_v42 = vld [vmem:[#allocation8 + $0x60] sm:$0xff]  ;;  %v238_v43 = vld [vmem:[#allocation8 + $0xd8] sm:$0xff]  ;;  %v237_v45 = vld [vmem:[#allocation8 + $0xd0] sm:$0xff] }
  0x37   :  { %110 = vmatprep.subr.mxu0 %v81_v15  ;;  %349 = vmatprep.subr.mxu1 %v241_v37  ;;  %v222_v44 = vld [vmem:[#allocation8 + $0x58] sm:$0xff]  ;;  %v221_v46 = vld [vmem:[#allocation8 + $0x50] sm:$0xff]  ;;  %v236_v47 = vld [vmem:[#allocation8 + $0xc8] sm:$0xff] }
  0x38   :  { %111 = vmatpush1.msra.mxu0 %v80_v16  ;;  %350 = vmatpush3.msra.mxu1 %v225_v38  ;;  %v220_v48 = vld [vmem:[#allocation8 + $0x48] sm:$0xff]  ;;  %v235_v49 = vld [vmem:[#allocation8 + $0xc0] sm:$0xff]  ;;  %v234_v51 = vld [vmem:[#allocation8 + $0xb8] sm:$0xff] }
  0x39   :  { %112 = vmatprep.subr.mxu0 %v79_v17  ;;  %351 = vmatprep.subr.mxu1 %v240_v39  ;;  %v219_v50 = vld [vmem:[#allocation8 + $0x40] sm:$0xff]  ;;  %v218_v52 = vld [vmem:[#allocation8 + $0x38] sm:$0xff]  ;;  %v233_v53 = vld [vmem:[#allocation8 + $0xb0] sm:$0xff] }
  0x3a   :  { %113 = vmatpush1.msra.mxu0 %v78_v18  ;;  %352 = vmatpush3.msra.mxu1 %v224_v40  ;;  %v217_v54 = vld [vmem:[#allocation8 + $0x30] sm:$0xff]  ;;  %v232_v55 = vld [vmem:[#allocation8 + $0xa8] sm:$0xff]  ;;  %v231_v57 = vld [vmem:[#allocation8 + $0xa0] sm:$0xff] }
  0x3b   :  { %114 = vmatprep.subr.mxu0 %v77_v19  ;;  %353 = vmatprep.subr.mxu1 %v239_v41  ;;  %v216_v56 = vld [vmem:[#allocation8 + $0x28] sm:$0xff]  ;;  %v215_v58 = vld [vmem:[#allocation8 + $0x20] sm:$0xff]  ;;  %v230_v59 = vld [vmem:[#allocation8 + $0x98] sm:$0xff] }
  0x3c   :  { %115 = vmatpush1.msra.mxu0 %v76_v20  ;;  %354 = vmatpush3.msra.mxu1 %v223_v42  ;;  %v214_v60 = vld [vmem:[#allocation8 + $0x18] sm:$0xff]  ;;  %v229_v61 = vld [vmem:[#allocation8 + $0x90] sm:$0xff]  ;;  %v228_v63 = vld [vmem:[#allocation8 + $0x88] sm:$0xff] }
  0x3d   :  { %116 = vmatprep.subr.mxu0 %v75_v21  ;;  %355 = vmatprep.subr.mxu1 %v238_v43  ;;  %v213_v62 = vld [vmem:[#allocation8 + $0x10] sm:$0xff]  ;;  %v227_v1 = vld [vmem:[#allocation8 + $0x80] sm:$0xff] }
  0x3e   :  { %117 = vmatpush1.msra.mxu0 %v74_v22  ;;  %356 = vmatpush3.msra.mxu1 %v222_v44  ;;  %v211_v2 = vld [vmem:[#allocation8] sm:$0xff] }
  0x3f   :  { %118 = vmatprep.subr.mxu0 %v73_v23  ;;  %357 = vmatprep.subr.mxu1 %v237_v45 }
  0x40   :  { %119 = vmatpush1.msra.mxu0 %v72_v24  ;;  %358 = vmatpush3.msra.mxu1 %v221_v46 }
  0x41   :  { %120 = vmatprep.subr.mxu0 %v71_v25  ;;  %359 = vmatprep.subr.mxu1 %v236_v47 }
  0x42   :  { %121 = vmatpush1.msra.mxu0 %v70_v26  ;;  %360 = vmatpush3.msra.mxu1 %v220_v48 }
  0x43   :  { %122 = vmatprep.subr.mxu0 %v69_v27  ;;  %361 = vmatprep.subr.mxu1 %v235_v49 }
  0x44   :  { %123 = vmatpush1.msra.mxu0 %v68_v28  ;;  %362 = vmatpush3.msra.mxu1 %v219_v50 }
  0x45   :  { %124 = vmatprep.subr.mxu0 %v67_v29  ;;  %363 = vmatprep.subr.mxu1 %v234_v51 }
  0x46   :  { %125 = vmatpush1.msra.mxu0 %v66_v30  ;;  %364 = vmatpush3.msra.mxu1 %v218_v52 }
  0x47   :  { %126 = vmatprep.subr.mxu0 %v65_v31  ;;  %365 = vmatprep.subr.mxu1 %v233_v53 }
  0x48   :  { %127 = vmatpush1.msra.mxu0 %v64_v32  ;;  %366 = vmatpush3.msra.mxu1 %v217_v54 }
  0x49   :  { %161 = vmatmul.mubr.f32.vlgmr.msra.gmra.mxu0 %v62_v33  ;;  %367 = vmatprep.subr.mxu1 %v232_v55 }
  0x4a   :  { %166 = vmatprep.mubr.f32.mxu0 %v495_v0  ;;  %368 = vmatpush3.msra.mxu1 %v216_v56  ;;  %v212_v0 = vld [vmem:[#allocation8 + $0x8] sm:$0xff] }
  0x4b   :  { %369 = vmatprep.subr.mxu1 %v231_v57 }
  0x4c   :  { %370 = vmatpush3.msra.mxu1 %v215_v58 }
  0x4d   :  { %167 = vmatmul.mubr.f32.gmra.mxu0 %v63_v34  ;;  %371 = vmatprep.subr.mxu1 %v230_v59 }
  0x4e   :  { %372 = vmatpush3.msra.mxu1 %v214_v60 }
  0x4f   :  { %373 = vmatprep.subr.mxu1 %v229_v61 }
  0x50   :  { %374 = vmatpush3.msra.mxu1 %v213_v62 }
  0x51   :  { %375 = vmatprep.subr.mxu1 %v228_v63 }
  0x52   :  { %376 = vmatpush3.msra.mxu1 %v212_v0 }
  0x53   :  { %377 = vmatprep.subr.mxu1 %v227_v1 }
  0x54   :  { %378 = vmatpush3.msra.mxu1 %v211_v2 }
 0x109   :  { %v162_v3 = vpop.f32.mrf.mxu0 }
 0x10a   :  { %v177_v4 = vmul.f32 %v162_v3, %v162_v3  ;;  %v173_v33 = vmul.f32 0.5, %v162_v3 }
 0x10b   :  { %v164_v5 = vpop.f32.mrf.mxu0 }
 0x10c   :  { %v181_v6 = vmul.f32 %v177_v4, %v162_v3  ;;  %v178_v7 = vmul.f32 %v164_v5, %v164_v5  ;;  %v174_v30 = vmul.f32 0.5, %v164_v5 }
 0x10d   :  { %v168_v8 = vpop.f32.mrf.mxu0 }
 0x10e   :  { %v185_v9 = vmul.f32 0.044715, %v181_v6  ;;  %v182_v10 = vmul.f32 %v178_v7, %v164_v5  ;;  %v179_v11 = vmul.f32 %v168_v8, %v168_v8  ;;  %v175_v40 = vmul.f32 0.5, %v168_v8 }
 0x10f   :  { %v170_v12 = vpop.f32.mrf.mxu0 }
 0x110   :  { %v189_v13 = vadd.f32 %v185_v9, %v162_v3  ;;  %v186_v14 = vmul.f32 0.044715, %v182_v10  ;;  %v183_v15 = vmul.f32 %v179_v11, %v168_v8  ;;  %v180_v16 = vmul.f32 %v170_v12, %v170_v12 }
 0x111   :  { %v176_v38 = vmul.f32 0.5, %v170_v12 }
 0x112   :  { %v193_v17 = vmul.f32 0.7978845, %v189_v13  ;;  %v190_v18 = vadd.f32 %v186_v14, %v164_v5  ;;  %v187_v19 = vmul.f32 0.044715, %v183_v15  ;;  %v184_v20 = vmul.f32 %v180_v16, %v170_v12 }
 0x114   :  { %394 = vtanh.f32 %v193_v17  ;;  %v191_v21 = vadd.f32 %v187_v19, %v168_v8  ;;  %v194_v22 = vmul.f32 0.7978845, %v190_v18  ;;  %v188_v23 = vmul.f32 0.044715, %v184_v20 }
 0x116   :  { %v195_v24 = vmul.f32 0.7978845, %v191_v21  ;;  %396 = vtanh.f32 %v194_v22  ;;  %v192_v25 = vadd.f32 %v188_v23, %v170_v12 }
 0x118   :  { %398 = vtanh.f32 %v195_v24  ;;  %v196_v26 = vmul.f32 0.7978845, %v192_v25 }
 0x11a   :  { %400 = vtanh.f32 %v196_v26 }
 0x121   :  { %v395_v27 = vpop.eup %394 }
 0x122   :  { %v201_v29 = vadd.f32 1.0, %v395_v27 }
 0x123   :  { %v397_v28 = vpop.eup %396 }
 0x124   :  { %v202_v31 = vadd.f32 1.0, %v397_v28  ;;  %v205_v35 = vmul.f32 %v201_v29, %v173_v33 }
 0x125   :  { %v399_v32 = vpop.eup %398 }
 0x126   :  { %v206_v34 = vmul.f32 %v202_v31, %v174_v30  ;;  %v203_v37 = vadd.f32 1.0, %v399_v32 }
 0x127   :  { %v401_v36 = vpop.eup %400 }
 0x128   :  { %307 = vmatprep.mubr.f32.mxu1 %v206_v34  ;;  %v204_v39 = vadd.f32 1.0, %v401_v36  ;;  %v207_v42 = vmul.f32 %v203_v37, %v175_v40 }
 0x129   :  { %308 = vmatmul.mubr.f32.vlgmr.msra.gmra.mxu1 %v205_v35 }
 0x12a   :  { %v208_v41 = vmul.f32 %v204_v39, %v176_v38 }
 0x12c   :  { %312 = vmatprep.mubr.f32.mxu1 %v208_v41 }
 0x12d   :  { %313 = vmatmul.mubr.f32.gmra.mxu1 %v207_v42 }
 0x1e9   :  { %v379_v43 = vpop.f32.mrf.mxu1 }
 0x1eb   :  { %v380_v44 = vpop.f32.mrf.mxu1 }
 0x1ec   :  { %v381_v45 = vadd.f32 %v380_v44, %v379_v43 }
 0x1ed   :  { %v382_v46 = vpop.f32.mrf.mxu1 }
 0x1ee   :  { %327 = vst [vmem:[#allocation9] sm:$0xff] %v381_v45 }
 0x1ef   :  { %v383_v47 = vpop.f32.mrf.mxu1 }
 0x1f0   :  { %v384_v48 = vadd.f32 %v383_v47, %v382_v46 }
 0x1f2   :  { %328 = vst [vmem:[#allocation9 + $0x8] sm:$0xff] %v384_v48 }
 0x1f3   :  { %473 = shalt.err (!%p470_p5)
}
 0x1f4   :  { %340 = dma.vmem_to_hbm [thread:$0]  %s335_s2, 256, %s543_s3, [#allocation5], %s492_s22, %s492_s22, %s493_s23  }
 0x1f5   :  { %486 = dma.done.wait [#allocation5], 256  }
 0x1f6   :  { %487 = vsyncadd [#allocation5], 4294967040 }
 0x1f7   :  { %344 = vsyncpa [#allocation4], 1 }
 0x1f8   :  { %345 = vsyncpa [#allocation7], 1 }
 0x1f9   :  { %346 = vsyncpa [#allocation5], 1 }

</bundles_post_ra>
